<compile_context>
chip_gen: v7x
topology: tpu7x:2x2x1
jax: 0.10.0
libtpu: 0.0.40
codegen_flags: <defaults>
</compile_context>

<pallas_src>
import jax
import jax.numpy as jnp
from jax.experimental import pallas as pl
from jax.experimental.pallas import tpu as pltpu


def _embedding_gather_kernel(idx_ref, table_hbm, out_ref, sem):
    # idx_ref:   (B,)   int32   in SMEM (scalar reads)
    # table_hbm: (V, D) float32 raw ref (pl.ANY -> typically HBM), not copied
    # out_ref:   (B, D) float32 in VMEM (final writeback handled by Pallas)
    # sem:       (B,)   DMA semaphores
    B, _ = out_ref.shape
    V = table_hbm.shape[0]

    # B is a small compile-time constant: this Python loop fully unrolls at
    # trace time into B independent row DMAs.  Start them all, then wait, so
    # the tiny transfers overlap each other.
    copies = []
    for b in range(B):
        row = idx_ref[b]                      # scalar index from SMEM
        row = jnp.clip(row, 0, V - 1)         # guard against OOB ids
        cp = pltpu.make_async_copy(
            table_hbm.at[pl.ds(row, 1), :],   # (1, D) row in HBM
            out_ref.at[pl.ds(b, 1), :],       # (1, D) row in VMEM output
            sem.at[b],
        )
        cp.start()
        copies.append(cp)
    for cp in copies:
        cp.wait()


def query_combined_features_forward(user_id, embedding_table):
    """user_id: (B,) integer indices; embedding_table: (V, D) float32."""
    B = user_id.shape[0]
    V, D = embedding_table.shape
    idx = user_id if user_id.dtype == jnp.int32 else user_id.astype(jnp.int32)

    cost = pl.CostEstimate(
        flops=0,
        transcendentals=0,
        # indices read + B rows read from HBM + B rows written
        bytes_accessed=B * 4 + B * D * 4 + B * D * 4,
    )

    return pl.pallas_call(
        _embedding_gather_kernel,
        out_shape=jax.ShapeDtypeStruct((B, D), jnp.float32),
        in_specs=[
            pl.BlockSpec(memory_space=pltpu.MemorySpace.SMEM),  # indices
            pl.BlockSpec(memory_space=pl.ANY),                  # table stays in HBM
        ],
        out_specs=pl.BlockSpec(memory_space=pltpu.MemorySpace.VMEM),
        scratch_shapes=[pltpu.SemaphoreType.DMA((B,))],
        cost_estimate=cost,
    )(idx, embedding_table)


if __name__ == "__main__":
    paragraph_in_dim = 128   # vocab size (V)
    paragraph_out_dim = 32   # embedding dim (D)
    batch = 8

    key = jax.random.PRNGKey(0)
    k_w, k_idx = jax.random.split(key)

    # Deterministic init mirroring the PyTorch module: uniform(-1/11.3, 1/11.3)
    initrange = 1.0 / 11.3
    embedding_table = jax.random.uniform(
        k_w, (paragraph_in_dim, paragraph_out_dim),
        minval=-initrange, maxval=initrange, dtype=jnp.float32,
    )

    user_id = jax.random.randint(
        k_idx, (batch,), 0, paragraph_in_dim, dtype=jnp.int32
    )

    out = query_combined_features_forward(user_id, embedding_table)
    out = jax.block_until_ready(out)

    # Sanity check against plain-JAX gather (the reference forward).
    ref = embedding_table[user_id]
    assert out.shape == (batch, paragraph_out_dim)
    assert jnp.allclose(out, ref, atol=1e-6), "mismatch vs reference gather"

    print("KERNEL_OK")
</pallas_src>

<mosaic_0001>
module attributes {stable_mosaic.version = 11 : i64} {
  func.func @_embedding_gather_kernel(%arg0: memref<8xi32, #tpu.memory_space<smem>>, %arg1: memref<128x32xf32, #tpu.memory_space<any>>, %arg2: memref<8x32xf32, #tpu.memory_space<vmem>>, %arg3: memref<8x!tpu.dma_semaphore, #tpu.memory_space<semaphore_mem>>) attributes {dimension_semantics = [], scalar_prefetch = 0 : i64, scratch_operands = 1 : i64, tpu.core_type = #tpu.core_type<tc>} {
    %c0 = arith.constant 0 : index
    %0 = memref.load %arg0[%c0] : memref<8xi32, #tpu.memory_space<smem>>
    %c0_i32 = arith.constant 0 : i32
    %c127_i32 = arith.constant 127 : i32
    %1 = arith.maxsi %c0_i32, %0 : i32
    %2 = arith.minsi %c127_i32, %1 : i32
    %c0_i32_0 = arith.constant 0 : i32
    %c0_i32_1 = arith.constant 0 : i32
    %3 = tpu.memref_slice %arg1[%2, %c0_i32_1] : memref<128x32xf32, #tpu.memory_space<any>> -> memref<1x32xf32, #tpu.memory_space<any>>
    %c0_i32_2 = arith.constant 0 : i32
    %c0_i32_3 = arith.constant 0 : i32
    %4 = tpu.memref_slice %arg2[%c0_i32_2, %c0_i32_3] : memref<8x32xf32, #tpu.memory_space<vmem>> -> memref<1x32xf32, #tpu.memory_space<vmem>>
    %5 = tpu.memref_slice %arg3[%c0_i32_0] : memref<8x!tpu.dma_semaphore, #tpu.memory_space<semaphore_mem>> -> memref<1x!tpu.dma_semaphore, #tpu.memory_space<semaphore_mem>>
    %6 = tpu.memref_squeeze %5 : memref<1x!tpu.dma_semaphore, #tpu.memory_space<semaphore_mem>> -> memref<!tpu.dma_semaphore, #tpu.memory_space<semaphore_mem>>
    tpu.enqueue_dma source(%3 : memref<1x32xf32, #tpu.memory_space<any>>) target(%4 : memref<1x32xf32, #tpu.memory_space<vmem>>) target_semaphore(%6 : memref<!tpu.dma_semaphore, #tpu.memory_space<semaphore_mem>>)
    %c1 = arith.constant 1 : index
    %7 = memref.load %arg0[%c1] : memref<8xi32, #tpu.memory_space<smem>>
    %c0_i32_4 = arith.constant 0 : i32
    %c127_i32_5 = arith.constant 127 : i32
    %8 = arith.maxsi %c0_i32_4, %7 : i32
    %9 = arith.minsi %c127_i32_5, %8 : i32
    %c1_i32 = arith.constant 1 : i32
    %c0_i32_6 = arith.constant 0 : i32
    %10 = tpu.memref_slice %arg1[%9, %c0_i32_6] : memref<128x32xf32, #tpu.memory_space<any>> -> memref<1x32xf32, #tpu.memory_space<any>>
    %c1_i32_7 = arith.constant 1 : i32
    %c0_i32_8 = arith.constant 0 : i32
    %11 = tpu.memref_slice %arg2[%c1_i32_7, %c0_i32_8] : memref<8x32xf32, #tpu.memory_space<vmem>> -> memref<1x32xf32, #tpu.memory_space<vmem>>
    %12 = tpu.memref_slice %arg3[%c1_i32] : memref<8x!tpu.dma_semaphore, #tpu.memory_space<semaphore_mem>> -> memref<1x!tpu.dma_semaphore, #tpu.memory_space<semaphore_mem>>
    %13 = tpu.memref_squeeze %12 : memref<1x!tpu.dma_semaphore, #tpu.memory_space<semaphore_mem>> -> memref<!tpu.dma_semaphore, #tpu.memory_space<semaphore_mem>>
    tpu.enqueue_dma source(%10 : memref<1x32xf32, #tpu.memory_space<any>>) target(%11 : memref<1x32xf32, #tpu.memory_space<vmem>>) target_semaphore(%13 : memref<!tpu.dma_semaphore, #tpu.memory_space<semaphore_mem>>)
    %c2 = arith.constant 2 : index
    %14 = memref.load %arg0[%c2] : memref<8xi32, #tpu.memory_space<smem>>
    %c0_i32_9 = arith.constant 0 : i32
    %c127_i32_10 = arith.constant 127 : i32
    %15 = arith.maxsi %c0_i32_9, %14 : i32
    %16 = arith.minsi %c127_i32_10, %15 : i32
    %c2_i32 = arith.constant 2 : i32
    %c0_i32_11 = arith.constant 0 : i32
    %17 = tpu.memref_slice %arg1[%16, %c0_i32_11] : memref<128x32xf32, #tpu.memory_space<any>> -> memref<1x32xf32, #tpu.memory_space<any>>
    %c2_i32_12 = arith.constant 2 : i32
    %c0_i32_13 = arith.constant 0 : i32
    %18 = tpu.memref_slice %arg2[%c2_i32_12, %c0_i32_13] : memref<8x32xf32, #tpu.memory_space<vmem>> -> memref<1x32xf32, #tpu.memory_space<vmem>>
    %19 = tpu.memref_slice %arg3[%c2_i32] : memref<8x!tpu.dma_semaphore, #tpu.memory_space<semaphore_mem>> -> memref<1x!tpu.dma_semaphore, #tpu.memory_space<semaphore_mem>>
    %20 = tpu.memref_squeeze %19 : memref<1x!tpu.dma_semaphore, #tpu.memory_space<semaphore_mem>> -> memref<!tpu.dma_semaphore, #tpu.memory_space<semaphore_mem>>
    tpu.enqueue_dma source(%17 : memref<1x32xf32, #tpu.memory_space<any>>) target(%18 : memref<1x32xf32, #tpu.memory_space<vmem>>) target_semaphore(%20 : memref<!tpu.dma_semaphore, #tpu.memory_space<semaphore_mem>>)
    %c3 = arith.constant 3 : index
    %21 = memref.load %arg0[%c3] : memref<8xi32, #tpu.memory_space<smem>>
    %c0_i32_14 = arith.constant 0 : i32
    %c127_i32_15 = arith.constant 127 : i32
    %22 = arith.maxsi %c0_i32_14, %21 : i32
    %23 = arith.minsi %c127_i32_15, %22 : i32
    %c3_i32 = arith.constant 3 : i32
    %c0_i32_16 = arith.constant 0 : i32
    %24 = tpu.memref_slice %arg1[%23, %c0_i32_16] : memref<128x32xf32, #tpu.memory_space<any>> -> memref<1x32xf32, #tpu.memory_space<any>>
    %c3_i32_17 = arith.constant 3 : i32
    %c0_i32_18 = arith.constant 0 : i32
    %25 = tpu.memref_slice %arg2[%c3_i32_17, %c0_i32_18] : memref<8x32xf32, #tpu.memory_space<vmem>> -> memref<1x32xf32, #tpu.memory_space<vmem>>
    %26 = tpu.memref_slice %arg3[%c3_i32] : memref<8x!tpu.dma_semaphore, #tpu.memory_space<semaphore_mem>> -> memref<1x!tpu.dma_semaphore, #tpu.memory_space<semaphore_mem>>
    %27 = tpu.memref_squeeze %26 : memref<1x!tpu.dma_semaphore, #tpu.memory_space<semaphore_mem>> -> memref<!tpu.dma_semaphore, #tpu.memory_space<semaphore_mem>>
    tpu.enqueue_dma source(%24 : memref<1x32xf32, #tpu.memory_space<any>>) target(%25 : memref<1x32xf32, #tpu.memory_space<vmem>>) target_semaphore(%27 : memref<!tpu.dma_semaphore, #tpu.memory_space<semaphore_mem>>)
    %c4 = arith.constant 4 : index
    %28 = memref.load %arg0[%c4] : memref<8xi32, #tpu.memory_space<smem>>
    %c0_i32_19 = arith.constant 0 : i32
    %c127_i32_20 = arith.constant 127 : i32
    %29 = arith.maxsi %c0_i32_19, %28 : i32
    %30 = arith.minsi %c127_i32_20, %29 : i32
    %c4_i32 = arith.constant 4 : i32
    %c0_i32_21 = arith.constant 0 : i32
    %31 = tpu.memref_slice %arg1[%30, %c0_i32_21] : memref<128x32xf32, #tpu.memory_space<any>> -> memref<1x32xf32, #tpu.memory_space<any>>
    %c4_i32_22 = arith.constant 4 : i32
    %c0_i32_23 = arith.constant 0 : i32
    %32 = tpu.memref_slice %arg2[%c4_i32_22, %c0_i32_23] : memref<8x32xf32, #tpu.memory_space<vmem>> -> memref<1x32xf32, #tpu.memory_space<vmem>>
    %33 = tpu.memref_slice %arg3[%c4_i32] : memref<8x!tpu.dma_semaphore, #tpu.memory_space<semaphore_mem>> -> memref<1x!tpu.dma_semaphore, #tpu.memory_space<semaphore_mem>>
    %34 = tpu.memref_squeeze %33 : memref<1x!tpu.dma_semaphore, #tpu.memory_space<semaphore_mem>> -> memref<!tpu.dma_semaphore, #tpu.memory_space<semaphore_mem>>
    tpu.enqueue_dma source(%31 : memref<1x32xf32, #tpu.memory_space<any>>) target(%32 : memref<1x32xf32, #tpu.memory_space<vmem>>) target_semaphore(%34 : memref<!tpu.dma_semaphore, #tpu.memory_space<semaphore_mem>>)
    %c5 = arith.constant 5 : index
    %35 = memref.load %arg0[%c5] : memref<8xi32, #tpu.memory_space<smem>>
    %c0_i32_24 = arith.constant 0 : i32
    %c127_i32_25 = arith.constant 127 : i32
    %36 = arith.maxsi %c0_i32_24, %35 : i32
    %37 = arith.minsi %c127_i32_25, %36 : i32
    %c5_i32 = arith.constant 5 : i32
    %c0_i32_26 = arith.constant 0 : i32
    %38 = tpu.memref_slice %arg1[%37, %c0_i32_26] : memref<128x32xf32, #tpu.memory_space<any>> -> memref<1x32xf32, #tpu.memory_space<any>>
    %c5_i32_27 = arith.constant 5 : i32
    %c0_i32_28 = arith.constant 0 : i32
    %39 = tpu.memref_slice %arg2[%c5_i32_27, %c0_i32_28] : memref<8x32xf32, #tpu.memory_space<vmem>> -> memref<1x32xf32, #tpu.memory_space<vmem>>
    %40 = tpu.memref_slice %arg3[%c5_i32] : memref<8x!tpu.dma_semaphore, #tpu.memory_space<semaphore_mem>> -> memref<1x!tpu.dma_semaphore, #tpu.memory_space<semaphore_mem>>
    %41 = tpu.memref_squeeze %40 : memref<1x!tpu.dma_semaphore, #tpu.memory_space<semaphore_mem>> -> memref<!tpu.dma_semaphore, #tpu.memory_space<semaphore_mem>>
    tpu.enqueue_dma source(%38 : memref<1x32xf32, #tpu.memory_space<any>>) target(%39 : memref<1x32xf32, #tpu.memory_space<vmem>>) target_semaphore(%41 : memref<!tpu.dma_semaphore, #tpu.memory_space<semaphore_mem>>)
    %c6 = arith.constant 6 : index
    %42 = memref.load %arg0[%c6] : memref<8xi32, #tpu.memory_space<smem>>
    %c0_i32_29 = arith.constant 0 : i32
    %c127_i32_30 = arith.constant 127 : i32
    %43 = arith.maxsi %c0_i32_29, %42 : i32
    %44 = arith.minsi %c127_i32_30, %43 : i32
    %c6_i32 = arith.constant 6 : i32
    %c0_i32_31 = arith.constant 0 : i32
    %45 = tpu.memref_slice %arg1[%44, %c0_i32_31] : memref<128x32xf32, #tpu.memory_space<any>> -> memref<1x32xf32, #tpu.memory_space<any>>
    %c6_i32_32 = arith.constant 6 : i32
    %c0_i32_33 = arith.constant 0 : i32
    %46 = tpu.memref_slice %arg2[%c6_i32_32, %c0_i32_33] : memref<8x32xf32, #tpu.memory_space<vmem>> -> memref<1x32xf32, #tpu.memory_space<vmem>>
    %47 = tpu.memref_slice %arg3[%c6_i32] : memref<8x!tpu.dma_semaphore, #tpu.memory_space<semaphore_mem>> -> memref<1x!tpu.dma_semaphore, #tpu.memory_space<semaphore_mem>>
    %48 = tpu.memref_squeeze %47 : memref<1x!tpu.dma_semaphore, #tpu.memory_space<semaphore_mem>> -> memref<!tpu.dma_semaphore, #tpu.memory_space<semaphore_mem>>
    tpu.enqueue_dma source(%45 : memref<1x32xf32, #tpu.memory_space<any>>) target(%46 : memref<1x32xf32, #tpu.memory_space<vmem>>) target_semaphore(%48 : memref<!tpu.dma_semaphore, #tpu.memory_space<semaphore_mem>>)
    %c7 = arith.constant 7 : index
    %49 = memref.load %arg0[%c7] : memref<8xi32, #tpu.memory_space<smem>>
    %c0_i32_34 = arith.constant 0 : i32
    %c127_i32_35 = arith.constant 127 : i32
    %50 = arith.maxsi %c0_i32_34, %49 : i32
    %51 = arith.minsi %c127_i32_35, %50 : i32
    %c7_i32 = arith.constant 7 : i32
    %c0_i32_36 = arith.constant 0 : i32
    %52 = tpu.memref_slice %arg1[%51, %c0_i32_36] : memref<128x32xf32, #tpu.memory_space<any>> -> memref<1x32xf32, #tpu.memory_space<any>>
    %c7_i32_37 = arith.constant 7 : i32
    %c0_i32_38 = arith.constant 0 : i32
    %53 = tpu.memref_slice %arg2[%c7_i32_37, %c0_i32_38] : memref<8x32xf32, #tpu.memory_space<vmem>> -> memref<1x32xf32, #tpu.memory_space<vmem>>
    %54 = tpu.memref_slice %arg3[%c7_i32] : memref<8x!tpu.dma_semaphore, #tpu.memory_space<semaphore_mem>> -> memref<1x!tpu.dma_semaphore, #tpu.memory_space<semaphore_mem>>
    %55 = tpu.memref_squeeze %54 : memref<1x!tpu.dma_semaphore, #tpu.memory_space<semaphore_mem>> -> memref<!tpu.dma_semaphore, #tpu.memory_space<semaphore_mem>>
    tpu.enqueue_dma source(%52 : memref<1x32xf32, #tpu.memory_space<any>>) target(%53 : memref<1x32xf32, #tpu.memory_space<vmem>>) target_semaphore(%55 : memref<!tpu.dma_semaphore, #tpu.memory_space<semaphore_mem>>)
    %c0_i32_39 = arith.constant 0 : i32
    %c0_i32_40 = arith.constant 0 : i32
    %56 = tpu.memref_slice %arg1[%2, %c0_i32_40] : memref<128x32xf32, #tpu.memory_space<any>> -> memref<1x32xf32, #tpu.memory_space<any>>
    %c0_i32_41 = arith.constant 0 : i32
    %c0_i32_42 = arith.constant 0 : i32
    %57 = tpu.memref_slice %arg2[%c0_i32_41, %c0_i32_42] : memref<8x32xf32, #tpu.memory_space<vmem>> -> memref<1x32xf32, #tpu.memory_space<vmem>>
    %58 = tpu.memref_slice %arg3[%c0_i32_39] : memref<8x!tpu.dma_semaphore, #tpu.memory_space<semaphore_mem>> -> memref<1x!tpu.dma_semaphore, #tpu.memory_space<semaphore_mem>>
    %59 = tpu.memref_squeeze %58 : memref<1x!tpu.dma_semaphore, #tpu.memory_space<semaphore_mem>> -> memref<!tpu.dma_semaphore, #tpu.memory_space<semaphore_mem>>
    tpu.wait_dma2 semaphore(%59 : memref<!tpu.dma_semaphore, #tpu.memory_space<semaphore_mem>>) src(%56 : memref<1x32xf32, #tpu.memory_space<any>>) dst(%57 : memref<1x32xf32, #tpu.memory_space<vmem>>)
    %c1_i32_43 = arith.constant 1 : i32
    %c0_i32_44 = arith.constant 0 : i32
    %60 = tpu.memref_slice %arg1[%9, %c0_i32_44] : memref<128x32xf32, #tpu.memory_space<any>> -> memref<1x32xf32, #tpu.memory_space<any>>
    %c1_i32_45 = arith.constant 1 : i32
    %c0_i32_46 = arith.constant 0 : i32
    %61 = tpu.memref_slice %arg2[%c1_i32_45, %c0_i32_46] : memref<8x32xf32, #tpu.memory_space<vmem>> -> memref<1x32xf32, #tpu.memory_space<vmem>>
    %62 = tpu.memref_slice %arg3[%c1_i32_43] : memref<8x!tpu.dma_semaphore, #tpu.memory_space<semaphore_mem>> -> memref<1x!tpu.dma_semaphore, #tpu.memory_space<semaphore_mem>>
    %63 = tpu.memref_squeeze %62 : memref<1x!tpu.dma_semaphore, #tpu.memory_space<semaphore_mem>> -> memref<!tpu.dma_semaphore, #tpu.memory_space<semaphore_mem>>
    tpu.wait_dma2 semaphore(%63 : memref<!tpu.dma_semaphore, #tpu.memory_space<semaphore_mem>>) src(%60 : memref<1x32xf32, #tpu.memory_space<any>>) dst(%61 : memref<1x32xf32, #tpu.memory_space<vmem>>)
    %c2_i32_47 = arith.constant 2 : i32
    %c0_i32_48 = arith.constant 0 : i32
    %64 = tpu.memref_slice %arg1[%16, %c0_i32_48] : memref<128x32xf32, #tpu.memory_space<any>> -> memref<1x32xf32, #tpu.memory_space<any>>
    %c2_i32_49 = arith.constant 2 : i32
    %c0_i32_50 = arith.constant 0 : i32
    %65 = tpu.memref_slice %arg2[%c2_i32_49, %c0_i32_50] : memref<8x32xf32, #tpu.memory_space<vmem>> -> memref<1x32xf32, #tpu.memory_space<vmem>>
    %66 = tpu.memref_slice %arg3[%c2_i32_47] : memref<8x!tpu.dma_semaphore, #tpu.memory_space<semaphore_mem>> -> memref<1x!tpu.dma_semaphore, #tpu.memory_space<semaphore_mem>>
    %67 = tpu.memref_squeeze %66 : memref<1x!tpu.dma_semaphore, #tpu.memory_space<semaphore_mem>> -> memref<!tpu.dma_semaphore, #tpu.memory_space<semaphore_mem>>
    tpu.wait_dma2 semaphore(%67 : memref<!tpu.dma_semaphore, #tpu.memory_space<semaphore_mem>>) src(%64 : memref<1x32xf32, #tpu.memory_space<any>>) dst(%65 : memref<1x32xf32, #tpu.memory_space<vmem>>)
    %c3_i32_51 = arith.constant 3 : i32
    %c0_i32_52 = arith.constant 0 : i32
    %68 = tpu.memref_slice %arg1[%23, %c0_i32_52] : memref<128x32xf32, #tpu.memory_space<any>> -> memref<1x32xf32, #tpu.memory_space<any>>
    %c3_i32_53 = arith.constant 3 : i32
    %c0_i32_54 = arith.constant 0 : i32
    %69 = tpu.memref_slice %arg2[%c3_i32_53, %c0_i32_54] : memref<8x32xf32, #tpu.memory_space<vmem>> -> memref<1x32xf32, #tpu.memory_space<vmem>>
    %70 = tpu.memref_slice %arg3[%c3_i32_51] : memref<8x!tpu.dma_semaphore, #tpu.memory_space<semaphore_mem>> -> memref<1x!tpu.dma_semaphore, #tpu.memory_space<semaphore_mem>>
    %71 = tpu.memref_squeeze %70 : memref<1x!tpu.dma_semaphore, #tpu.memory_space<semaphore_mem>> -> memref<!tpu.dma_semaphore, #tpu.memory_space<semaphore_mem>>
    tpu.wait_dma2 semaphore(%71 : memref<!tpu.dma_semaphore, #tpu.memory_space<semaphore_mem>>) src(%68 : memref<1x32xf32, #tpu.memory_space<any>>) dst(%69 : memref<1x32xf32, #tpu.memory_space<vmem>>)
    %c4_i32_55 = arith.constant 4 : i32
    %c0_i32_56 = arith.constant 0 : i32
    %72 = tpu.memref_slice %arg1[%30, %c0_i32_56] : memref<128x32xf32, #tpu.memory_space<any>> -> memref<1x32xf32, #tpu.memory_space<any>>
    %c4_i32_57 = arith.constant 4 : i32
    %c0_i32_58 = arith.constant 0 : i32
    %73 = tpu.memref_slice %arg2[%c4_i32_57, %c0_i32_58] : memref<8x32xf32, #tpu.memory_space<vmem>> -> memref<1x32xf32, #tpu.memory_space<vmem>>
    %74 = tpu.memref_slice %arg3[%c4_i32_55] : memref<8x!tpu.dma_semaphore, #tpu.memory_space<semaphore_mem>> -> memref<1x!tpu.dma_semaphore, #tpu.memory_space<semaphore_mem>>
    %75 = tpu.memref_squeeze %74 : memref<1x!tpu.dma_semaphore, #tpu.memory_space<semaphore_mem>> -> memref<!tpu.dma_semaphore, #tpu.memory_space<semaphore_mem>>
    tpu.wait_dma2 semaphore(%75 : memref<!tpu.dma_semaphore, #tpu.memory_space<semaphore_mem>>) src(%72 : memref<1x32xf32, #tpu.memory_space<any>>) dst(%73 : memref<1x32xf32, #tpu.memory_space<vmem>>)
    %c5_i32_59 = arith.constant 5 : i32
    %c0_i32_60 = arith.constant 0 : i32
    %76 = tpu.memref_slice %arg1[%37, %c0_i32_60] : memref<128x32xf32, #tpu.memory_space<any>> -> memref<1x32xf32, #tpu.memory_space<any>>
    %c5_i32_61 = arith.constant 5 : i32
    %c0_i32_62 = arith.constant 0 : i32
    %77 = tpu.memref_slice %arg2[%c5_i32_61, %c0_i32_62] : memref<8x32xf32, #tpu.memory_space<vmem>> -> memref<1x32xf32, #tpu.memory_space<vmem>>
    %78 = tpu.memref_slice %arg3[%c5_i32_59] : memref<8x!tpu.dma_semaphore, #tpu.memory_space<semaphore_mem>> -> memref<1x!tpu.dma_semaphore, #tpu.memory_space<semaphore_mem>>
    %79 = tpu.memref_squeeze %78 : memref<1x!tpu.dma_semaphore, #tpu.memory_space<semaphore_mem>> -> memref<!tpu.dma_semaphore, #tpu.memory_space<semaphore_mem>>
    tpu.wait_dma2 semaphore(%79 : memref<!tpu.dma_semaphore, #tpu.memory_space<semaphore_mem>>) src(%76 : memref<1x32xf32, #tpu.memory_space<any>>) dst(%77 : memref<1x32xf32, #tpu.memory_space<vmem>>)
    %c6_i32_63 = arith.constant 6 : i32
    %c0_i32_64 = arith.constant 0 : i32
    %80 = tpu.memref_slice %arg1[%44, %c0_i32_64] : memref<128x32xf32, #tpu.memory_space<any>> -> memref<1x32xf32, #tpu.memory_space<any>>
    %c6_i32_65 = arith.constant 6 : i32
    %c0_i32_66 = arith.constant 0 : i32
    %81 = tpu.memref_slice %arg2[%c6_i32_65, %c0_i32_66] : memref<8x32xf32, #tpu.memory_space<vmem>> -> memref<1x32xf32, #tpu.memory_space<vmem>>
    %82 = tpu.memref_slice %arg3[%c6_i32_63] : memref<8x!tpu.dma_semaphore, #tpu.memory_space<semaphore_mem>> -> memref<1x!tpu.dma_semaphore, #tpu.memory_space<semaphore_mem>>
    %83 = tpu.memref_squeeze %82 : memref<1x!tpu.dma_semaphore, #tpu.memory_space<semaphore_mem>> -> memref<!tpu.dma_semaphore, #tpu.memory_space<semaphore_mem>>
    tpu.wait_dma2 semaphore(%83 : memref<!tpu.dma_semaphore, #tpu.memory_space<semaphore_mem>>) src(%80 : memref<1x32xf32, #tpu.memory_space<any>>) dst(%81 : memref<1x32xf32, #tpu.memory_space<vmem>>)
    %c7_i32_67 = arith.constant 7 : i32
    %c0_i32_68 = arith.constant 0 : i32
    %84 = tpu.memref_slice %arg1[%51, %c0_i32_68] : memref<128x32xf32, #tpu.memory_space<any>> -> memref<1x32xf32, #tpu.memory_space<any>>
    %c7_i32_69 = arith.constant 7 : i32
    %c0_i32_70 = arith.constant 0 : i32
    %85 = tpu.memref_slice %arg2[%c7_i32_69, %c0_i32_70] : memref<8x32xf32, #tpu.memory_space<vmem>> -> memref<1x32xf32, #tpu.memory_space<vmem>>
    %86 = tpu.memref_slice %arg3[%c7_i32_67] : memref<8x!tpu.dma_semaphore, #tpu.memory_space<semaphore_mem>> -> memref<1x!tpu.dma_semaphore, #tpu.memory_space<semaphore_mem>>
    %87 = tpu.memref_squeeze %86 : memref<1x!tpu.dma_semaphore, #tpu.memory_space<semaphore_mem>> -> memref<!tpu.dma_semaphore, #tpu.memory_space<semaphore_mem>>
    tpu.wait_dma2 semaphore(%87 : memref<!tpu.dma_semaphore, #tpu.memory_space<semaphore_mem>>) src(%84 : memref<1x32xf32, #tpu.memory_space<any>>) dst(%85 : memref<1x32xf32, #tpu.memory_space<vmem>>)
    return
  }
}

</mosaic_0001>

<bundles_post_ra>
// kernel: tpu_custom_call.1
= control target key start
LH: loop header
LB: loop body
LE: loop exit
PB: predicated region body
PF: predicated region fallthrough
CT: control target
= control target key end

     0   :  { %7 = vsyncpa [#allocation5], 0  ;;  %s802_s0 = inlined_call_operand.vmem [shape: s32[8], index: 0, kind: input, shape index: {}]   ;;  %s803_s1 = inlined_call_operand.vmem [shape: f32[128,32], index: 1, kind: input, shape index: {}]   ;;  %s804_s2 = inlined_call_operand.hbm [shape: f32[8,32], index: 2, kind: output, shape index: {}]  }
   0x1   :  { %8 = vsyncpa [#allocation4], 0  ;;  %s15_s11 = sshll.u32 %s802_s0, 4  ;;  %s16_s11 = int_to_ptr.vmem [resolvable:$true] %s15_s11 }
   0x2   :  { %s692_s12 = scalar_lea.vmem %s16_s11, 16  ;;  %p697_p1 = scmp.lt.s32.totalorder %s16_s11, %s16_s11 }
   0x3   :  { %p693_p0 = scmp.ne.s32.totalorder %s16_s11, %s692_s12  ;;  %p698_p2 = scmp.lt.s32.totalorder %s692_s12, %s692_s12 }
   0x5   :  { %p699_p3 = por %p698_p2, %p697_p1 }
   0x7   :  { %p700_p4 = pnand %p699_p3, %p693_p0 }
   0x9   :  { %703 = shalt.err (!%p700_p4)
}
   0xa   :  { %s746_s13 = smov [#allocation3]  }
   0xb   :  { %18 = dma.vmem_to_smem %s16_s11, 16, %s746_s13, [#allocation5]  }
   0xc   :  { %726 = dma.done.wait [#allocation5], 16  }
   0xd   :  { %727 = vsyncadd [#allocation5], 4294967280 }
   0xe   :  { %22 = sfence }
   0xf   :  { %s23_s14 = sld [smem:[#allocation3]] }
  0x15   :  { %p24_p5 = scmp.gt.s32.totalorder %s23_s14, 0  ;;  %p619_p6 = scmp.lt.s32.totalorder %s23_s14, 127 }
  0x17   :  { %s806_s14 = smov (!%p24_p5, %s23_s14), 0 }
  0x18   :  { %s808_s14 = smov (!%p619_p6, %s806_s14), 127 }
  0x19   :  { %s28_s16 = scalar_lea.vmem %s803_s1, %s808_s14 }
  0x1a   :  { %v46_v0 = vld [vmem:[%s28_s16] sm:$0x1] }
  0x1b   :  { %47 = vst [vmem:[#allocation6] sm:$0x1] %v46_v0 }
  0x1c   :  { %72 = vsyncadd [#allocation2], 16  ;;  %s624_s17 = sld [smem:[#allocation3 + $0x1]] }
  0x22   :  { %p74_p7 = scmp.gt.s32.totalorder %s624_s17, 0  ;;  %p625_p8 = scmp.lt.s32.totalorder %s624_s17, 127 }
  0x24   :  { %s810_s17 = smov (!%p74_p7, %s624_s17), 0 }
  0x25   :  { %s812_s17 = smov (!%p625_p8, %s810_s17), 127 }
  0x26   :  { %s78_s20 = scalar_lea.vmem %s803_s1, %s812_s17 }
  0x27   :  { %v98_v1 = vld [vmem:[%s78_s20] sm:$0x1] }
  0x28   :  { %99 = vst [vmem:[#allocation6 + $0x1] sm:$0x1] %v98_v1 }
  0x29   :  { %124 = vsyncadd [#allocation2 + $0x1], 16  ;;  %s630_s21 = sld [smem:[#allocation3 + $0x2]] }
  0x2f   :  { %p126_p9 = scmp.gt.s32.totalorder %s630_s21, 0  ;;  %p631_p10 = scmp.lt.s32.totalorder %s630_s21, 127 }
  0x31   :  { %s814_s21 = smov (!%p126_p9, %s630_s21), 0 }
  0x32   :  { %s816_s21 = smov (!%p631_p10, %s814_s21), 127 }
  0x33   :  { %s130_s24 = scalar_lea.vmem %s803_s1, %s816_s21 }
  0x34   :  { %v150_v2 = vld [vmem:[%s130_s24] sm:$0x1] }
  0x35   :  { %151 = vst [vmem:[#allocation6 + $0x2] sm:$0x1] %v150_v2 }
  0x36   :  { %176 = vsyncadd [#allocation2 + $0x2], 16  ;;  %s636_s25 = sld [smem:[#allocation3 + $0x3]] }
  0x3c   :  { %p178_p11 = scmp.gt.s32.totalorder %s636_s25, 0  ;;  %p637_p12 = scmp.lt.s32.totalorder %s636_s25, 127 }
  0x3e   :  { %s818_s25 = smov (!%p178_p11, %s636_s25), 0 }
  0x3f   :  { %s820_s25 = smov (!%p637_p12, %s818_s25), 127 }
  0x40   :  { %s182_s28 = scalar_lea.vmem %s803_s1, %s820_s25 }
  0x41   :  { %v202_v3 = vld [vmem:[%s182_s28] sm:$0x1] }
  0x42   :  { %203 = vst [vmem:[#allocation6 + $0x3] sm:$0x1] %v202_v3 }
  0x43   :  { %228 = vsyncadd [#allocation2 + $0x3], 16  ;;  %s642_s29 = sld [smem:[#allocation3 + $0x4]] }
  0x49   :  { %p230_p13 = scmp.gt.s32.totalorder %s642_s29, 0  ;;  %p643_p0 = scmp.lt.s32.totalorder %s642_s29, 127 }
  0x4b   :  { %s822_s29 = smov (!%p230_p13, %s642_s29), 0 }
  0x4c   :  { %s824_s29 = smov (!%p643_p0, %s822_s29), 127 }
  0x4d   :  { %s234_s4 = scalar_lea.vmem %s803_s1, %s824_s29 }
  0x4e   :  { %v254_v4 = vld [vmem:[%s234_s4] sm:$0x1] }
  0x4f   :  { %255 = vst [vmem:[#allocation6 + $0x4] sm:$0x1] %v254_v4 }
  0x50   :  { %280 = vsyncadd [#allocation2 + $0x4], 16  ;;  %s648_s5 = sld [smem:[#allocation3 + $0x5]] }
  0x56   :  { %p282_p1 = scmp.gt.s32.totalorder %s648_s5, 0  ;;  %p649_p2 = scmp.lt.s32.totalorder %s648_s5, 127 }
  0x58   :  { %s826_s5 = smov (!%p282_p1, %s648_s5), 0 }
  0x59   :  { %s828_s5 = smov (!%p649_p2, %s826_s5), 127 }
  0x5a   :  { %s286_s8 = scalar_lea.vmem %s803_s1, %s828_s5 }
  0x5b   :  { %v306_v5 = vld [vmem:[%s286_s8] sm:$0x1] }
  0x5c   :  { %307 = vst [vmem:[#allocation6 + $0x5] sm:$0x1] %v306_v5 }
  0x5d   :  { %332 = vsyncadd [#allocation2 + $0x5], 16  ;;  %s654_s9 = sld [smem:[#allocation3 + $0x6]] }
  0x63   :  { %p334_p3 = scmp.gt.s32.totalorder %s654_s9, 0  ;;  %p655_p4 = scmp.lt.s32.totalorder %s654_s9, 127 }
  0x65   :  { %s830_s9 = smov (!%p334_p3, %s654_s9), 0 }
  0x66   :  { %s832_s9 = smov (!%p655_p4, %s830_s9), 127 }
  0x67   :  { %s338_s12 = scalar_lea.vmem %s803_s1, %s832_s9 }
  0x68   :  { %v358_v6 = vld [vmem:[%s338_s12] sm:$0x1] }
  0x69   :  { %359 = vst [vmem:[#allocation6 + $0x6] sm:$0x1] %v358_v6 }
  0x6a   :  { %384 = vsyncadd [#allocation2 + $0x6], 16  ;;  %s660_s13 = sld [smem:[#allocation3 + $0x7]] }
  0x70   :  { %p386_p5 = scmp.gt.s32.totalorder %s660_s13, 0  ;;  %p661_p6 = scmp.lt.s32.totalorder %s660_s13, 127 }
  0x72   :  { %s834_s13 = smov (!%p386_p5, %s660_s13), 0 }
  0x73   :  { %s836_s13 = smov (!%p661_p6, %s834_s13), 127 }
  0x74   :  { %s390_s0 = scalar_lea.vmem %s803_s1, %s836_s13 }
  0x75   :  { %v410_v7 = vld [vmem:[%s390_s0] sm:$0x1] }
  0x76   :  { %411 = vst [vmem:[#allocation6 + $0x7] sm:$0x1] %v410_v7 }
  0x77   :  { %436 = vsyncadd [#allocation2 + $0x7], 16 }
  0x78   :  { %728 = dma.done.wait [#allocation2], 16 }
  0x79   :  { %729 = vsyncadd [#allocation2], 4294967280 }
  0x7a   :  { %730 = dma.done.wait [#allocation2 + $0x1], 16 }
  0x7b   :  { %731 = vsyncadd [#allocation2 + $0x1], 4294967280 }
  0x7c   :  { %732 = dma.done.wait [#allocation2 + $0x2], 16 }
  0x7d   :  { %733 = vsyncadd [#allocation2 + $0x2], 4294967280 }
  0x7e   :  { %734 = dma.done.wait [#allocation2 + $0x3], 16 }
  0x7f   :  { %735 = vsyncadd [#allocation2 + $0x3], 4294967280 }
  0x80   :  { %736 = dma.done.wait [#allocation2 + $0x4], 16 }
  0x81   :  { %737 = vsyncadd [#allocation2 + $0x4], 4294967280 }
  0x82   :  { %738 = dma.done.wait [#allocation2 + $0x5], 16 }
  0x83   :  { %739 = vsyncadd [#allocation2 + $0x5], 4294967280 }
  0x84   :  { %740 = dma.done.wait [#allocation2 + $0x6], 16 }
  0x85   :  { %741 = vsyncadd [#allocation2 + $0x6], 4294967280 }
  0x86   :  { %742 = dma.done.wait [#allocation2 + $0x7], 16 }
  0x87   :  { %743 = vsyncadd [#allocation2 + $0x7], 4294967280  ;;  %s747_s1 = smov [#allocation6]  }
  0x88   :  { %s460_s16 = sshll.u32 %s747_s1, 4  ;;  %s461_s16 = int_to_ptr.vmem [resolvable:$true] %s460_s16 }
  0x89   :  { %s704_s17 = scalar_lea.vmem %s461_s16, 128  ;;  %p709_p8 = scmp.lt.s32.totalorder %s461_s16, %s461_s16 }
  0x8a   :  { %p705_p7 = scmp.ne.s32.totalorder %s461_s16, %s704_s17  ;;  %p710_p9 = scmp.lt.s32.totalorder %s704_s17, %s704_s17 }
  0x8c   :  { %p711_p10 = por %p710_p9, %p709_p8 }
  0x8e   :  { %p712_p11 = pnand %p711_p10, %p705_p7 }
  0x90   :  { %715 = shalt.err (!%p712_p11)
}
  0x91   :  { %s716_s20 = scalar_lea.hbm %s804_s2, 128 }
  0x92   :  { %p717_p12 = scmp.ne.s32.totalorder %s804_s2, %s716_s20  ;;  %p720_p13 = scmp.lt.u32.totalorder %s716_s20, %s804_s2 }
  0x94   :  { %p722_p0 = pnand %p720_p13, %p717_p12 }
  0x96   :  { %725 = shalt.err (!%p722_p0)
}
  0x97   :  { %463 = dma.vmem_to_hbm [thread:$0]  %s461_s16, 128, %s804_s2, [#allocation4]  }
  0x98   :  { %744 = dma.done.wait [#allocation4], 128  }
  0x99   :  { %745 = vsyncadd [#allocation4], 4294967168 }
  0x9a   :  { %467 = vsyncpa [#allocation4], 1 }
  0x9b   :  { %468 = vsyncpa [#allocation5], 1 }
  0x9c   :  { %469 = vsyncmov [#allocation2] }
  0x9f   :  { %s470_s27 = vpop.sfrf %469 }
  0xa0   :  { %p666_p1 = scmp.ne.s32.totalorder %s470_s27, 0 }
  0xa2   :  { %474 = shalt.err (%p666_p1)  }
  0xa3   :  { %476 = vsyncmov [#allocation2 + $0x1] }
  0xa6   :  { %s477_s28 = vpop.sfrf %476 }
  0xa7   :  { %p667_p2 = scmp.ne.s32.totalorder %s477_s28, 0 }
  0xa9   :  { %481 = shalt.err (%p667_p2)  }
  0xaa   :  { %483 = vsyncmov [#allocation2 + $0x2] }
  0xad   :  { %s484_s29 = vpop.sfrf %483 }
  0xae   :  { %p668_p3 = scmp.ne.s32.totalorder %s484_s29, 0 }
  0xb0   :  { %488 = shalt.err (%p668_p3)  }
  0xb1   :  { %490 = vsyncmov [#allocation2 + $0x3] }
  0xb4   :  { %s491_s30 = vpop.sfrf %490 }
  0xb5   :  { %p669_p4 = scmp.ne.s32.totalorder %s491_s30, 0 }
  0xb7   :  { %495 = shalt.err (%p669_p4)  }
  0xb8   :  { %497 = vsyncmov [#allocation2 + $0x4] }
  0xbb   :  { %s498_s2 = vpop.sfrf %497 }
  0xbc   :  { %p670_p5 = scmp.ne.s32.totalorder %s498_s2, 0 }
  0xbe   :  { %502 = shalt.err (%p670_p5)  }
  0xbf   :  { %504 = vsyncmov [#allocation2 + $0x5] }
  0xc2   :  { %s505_s3 = vpop.sfrf %504 }
  0xc3   :  { %p671_p6 = scmp.ne.s32.totalorder %s505_s3, 0 }
  0xc5   :  { %509 = shalt.err (%p671_p6)  }
  0xc6   :  { %511 = vsyncmov [#allocation2 + $0x6] }
  0xc9   :  { %s512_s4 = vpop.sfrf %511 }
  0xca   :  { %p672_p7 = scmp.ne.s32.totalorder %s512_s4, 0 }
  0xcc   :  { %516 = shalt.err (%p672_p7)  }
  0xcd   :  { %518 = vsyncmov [#allocation2 + $0x7] }
  0xd0   :  { %s519_s5 = vpop.sfrf %518 }
  0xd1   :  { %p673_p8 = scmp.ne.s32.totalorder %s519_s5, 0 }
  0xd3   :  { %523 = shalt.err (%p673_p8)  }

</bundles_post_ra>
